<compile_context>
chip_gen: v6e
topology: v6e:2x2x1
jax: 0.10.0
libtpu: 0.0.40
codegen_flags: <defaults>
</compile_context>

<pallas_src>
import jax
import jax.numpy as jnp
from jax import lax
from jax.experimental import pallas as pl
from jax.experimental.pallas import tpu as pltpu


_VMEM_BUDGET = 40 * 1024 * 1024      # per-step working-set target (fits v7x)
_VMEM_LIMIT_CAP = 48 * 1024 * 1024   # scoped VMEM limit cap (< 64 MiB on v7x)


def _parser_kernel(xq_ref, xk_ref, warc_ref, wproj_ref,
                   tree_ref, head_ref, proj_ref):
    bt, tq, h = xq_ref.shape
    s = xk_ref.shape[1]

    # All inputs arrive already in bf16 (cast once in the wrapper).
    xq = xq_ref[...]                                   # (bt, tq, H) queries
    xk = xk_ref[...]                                   # (bt, S,  H) keys
    w_arc = warc_ref[...]                              # (H, H)
    w_proj = wproj_ref[...]                            # (H, PD_pad)

    xq2 = xq.reshape(bt * tq, h)                       # (bt*tq, H)

    # --- biaffine arc scores: (x_q @ W_arc) @ x_k^T, both passes on the MXU --
    xw = jnp.dot(xq2, w_arc, preferred_element_type=jnp.float32)  # (bt*tq, H)
    xw = xw.reshape(bt, tq, h).astype(jnp.bfloat16)
    # Batched contraction over the last (lane) dim -> no explicit transpose.
    scores = jnp.einsum("bqh,bkh->bqk", xw, xk,
                        preferred_element_type=jnp.float32)       # (bt, tq, S)

    # --- row-wise softmax over candidate heads (f32 math) --------------------
    m = jnp.max(scores, axis=-1, keepdims=True)
    d = scores - m                          # exactly 0.0 at each row's max
    e = jnp.exp(d)
    denom = jnp.sum(e, axis=-1, keepdims=True)
    tree_ref[...] = (e * pl.reciprocal(denom, approx=True)).astype(tree_ref.dtype)

    # --- hard head index (first argmax), reusing d; iota kept (1, 1, S) ------
    col = lax.broadcasted_iota(jnp.int32, (1, 1, s), 2)
    head = jnp.min(jnp.where(d >= 0.0, col, jnp.int32(s)), axis=-1)  # (bt, tq)
    head_ref[...] = head.reshape(bt, 1, tq).astype(jnp.int32)

    # --- fused POS + dep-label projection: one lane-dense (PD_pad) matmul ----
    proj = jnp.dot(xq2, w_proj, preferred_element_type=jnp.float32)
    proj_ref[...] = proj.reshape(bt, tq, proj_ref.shape[-1])


def _step_vmem_bytes(bt, tq, s, h, pd_pad, tree_bytes):
    """Rough per-grid-step VMEM footprint: double-buffered blocks + live temps."""
    xq = bt * tq * h * 2                    # bf16 query block
    xk = bt * s * h * 2                     # bf16 key block (full S)
    w = h * h * 2 + h * pd_pad * 2          # bf16 weights (shared, double-buffered)
    tree = bt * tq * s * tree_bytes
    head = bt * tq * 4
    proj = bt * tq * pd_pad * 4
    temps = 4 * bt * tq * s * 4             # scores / d / e / where f32 slabs
    return 2 * (xq + xk + tree + head + proj) + 2 * w + temps


def _pick_tiles(batch, seq, hidden, pd_pad, tree_bytes, budget):
    """Pick (batch_tile, q_tile).

    q_tile must divide S and be either S or a multiple of 128 so every output
    block (tree (bt,tq,S), head (bt,1,tq), proj (bt,tq,PDpad)) stays
    (8,128)-legal. batch_tile may be any divisor of B (all blocks keep their
    last two dims full / aligned). Prefer the biggest tiles under the VMEM
    budget, then leave >=2 grid steps when the batch allows (megacore)."""
    q_cands = sorted({q for q in range(1, seq + 1)
                      if seq % q == 0 and (q == seq or q % 128 == 0)},
                     reverse=True)
    tq = q_cands[-1]
    for q in q_cands:
        if _step_vmem_bytes(1, q, seq, hidden, pd_pad, tree_bytes) <= budget:
            tq = q
            break

    b_cands = sorted({b for b in range(1, batch + 1) if batch % b == 0},
                     reverse=True)
    bt = 1
    for b in b_cands:
        if _step_vmem_bytes(b, tq, seq, hidden, pd_pad, tree_bytes) <= budget:
            bt = b
            break

    # Prefer >= 2 grid steps so the 'parallel' axis can be split across
    # TensorCores and the pipeline has something to overlap.
    if batch > 1 and bt == batch and seq // tq == 1:
        smaller = [b for b in b_cands if b < batch]
        if smaller:
            bt = smaller[0]
    return bt, tq


def dep_tree_parser_forward(x, w_arc, w_pos, w_dep, *,
                            batch_tile=None, q_tile=None,
                            tree_dtype=jnp.float32):
    """x: [B, S, H] token embeddings.
    Returns (soft_tree [B,S,S], head_idx [B,S], pos_logits [B,S,P],
             dep_logits [B,S,D])."""
    B, S, H = x.shape
    P = w_pos.shape[1]
    D = w_dep.shape[1]
    PD = P + D
    PD_PAD = ((PD + 127) // 128) * 128          # lane-dense projection output

    # Fuse + zero-pad the projection weights; cast everything to bf16 once so
    # the HBM->VMEM DMAs move half the bytes and the kernel does no casts.
    w_proj = jnp.concatenate([w_pos, w_dep], axis=1)
    if PD_PAD != PD:
        w_proj = jnp.pad(w_proj, ((0, 0), (0, PD_PAD - PD)))
    x_bf = x.astype(jnp.bfloat16)
    w_arc_bf = w_arc.astype(jnp.bfloat16)
    w_proj_bf = w_proj.astype(jnp.bfloat16)

    tree_bytes = jnp.dtype(tree_dtype).itemsize
    bt, tq = _pick_tiles(B, S, H, PD_PAD, tree_bytes, _VMEM_BUDGET)
    if batch_tile is not None:
        bt = batch_tile
    if q_tile is not None:
        tq = q_tile
    assert B % bt == 0, "batch_tile must divide B"
    assert S % tq == 0, "q_tile must divide S"
    grid = (B // bt, S // tq)

    vmem_limit = int(min(max(2 * _step_vmem_bytes(bt, tq, S, H, PD_PAD, tree_bytes),
                             32 * 1024 * 1024),
                         _VMEM_LIMIT_CAP))

    out_shapes = (
        jax.ShapeDtypeStruct((B, S, S), tree_dtype),       # soft dependency tree
        jax.ShapeDtypeStruct((B, 1, S), jnp.int32),        # head index (S on lanes)
        jax.ShapeDtypeStruct((B, S, PD_PAD), jnp.float32), # fused, lane-padded logits
    )
    in_specs = [
        pl.BlockSpec((bt, tq, H), lambda b, q: (b, q, 0)),   # query rows
        pl.BlockSpec((bt, S, H), lambda b, q: (b, 0, 0)),    # full-S key rows
        pl.BlockSpec((H, H), lambda b, q: (0, 0)),           # shared arc weight
        pl.BlockSpec((H, PD_PAD), lambda b, q: (0, 0)),      # shared fused projection
    ]
    out_specs = (
        pl.BlockSpec((bt, tq, S), lambda b, q: (b, q, 0)),
        pl.BlockSpec((bt, 1, tq), lambda b, q: (b, 0, q)),
        pl.BlockSpec((bt, tq, PD_PAD), lambda b, q: (b, q, 0)),
    )

    soft_tree, head_idx, proj = pl.pallas_call(
        _parser_kernel,
        out_shape=out_shapes,
        grid=grid,
        in_specs=in_specs,
        out_specs=out_specs,
        compiler_params=pltpu.CompilerParams(
            dimension_semantics=("parallel", "parallel"),
            vmem_limit_bytes=vmem_limit),
    )(x_bf, x_bf, w_arc_bf, w_proj_bf)

    head_idx = head_idx.reshape(B, S)
    pos_logits = proj[..., :P]
    dep_logits = proj[..., P:PD]
    return soft_tree, head_idx, pos_logits, dep_logits


if __name__ == "__main__":
    # Small shapes: batch=2, seq=8 tokens, hidden=32, 16 POS tags, 32 dep labels.
    B, S, H, P, D = 2, 8, 32, 16, 32

    key = jax.random.PRNGKey(0)
    k_x, k_arc, k_pos, k_dep = jax.random.split(key, 4)

    x = jax.random.normal(k_x, (B, S, H), dtype=jnp.float32)
    w_arc = 0.1 * jax.random.normal(k_arc, (H, H), dtype=jnp.float32)
    w_pos = 0.1 * jax.random.normal(k_pos, (H, P), dtype=jnp.float32)
    w_dep = 0.1 * jax.random.normal(k_dep, (H, D), dtype=jnp.float32)

    soft_tree, head_idx, pos_logits, dep_logits = dep_tree_parser_forward(
        x, w_arc, w_pos, w_dep)
    jax.block_until_ready((soft_tree, head_idx, pos_logits, dep_logits))

    # Sanity checks against a pure-JAX reference that mirrors the kernel's
    # bf16-operand / f32-accumulate matmuls (tolerances loosened for bf16 and
    # the approximate EUP reciprocal used in the softmax normalization).
    x_bf = x.astype(jnp.bfloat16)
    wa_bf = w_arc.astype(jnp.bfloat16)
    wproj_bf = jnp.concatenate([w_pos, w_dep], axis=1).astype(jnp.bfloat16)

    xw_ref = jnp.dot(x_bf.reshape(B * S, H), wa_bf,
                     preferred_element_type=jnp.float32)
    xw_ref = xw_ref.reshape(B, S, H).astype(jnp.bfloat16)
    scores_ref = jnp.einsum("bqh,bkh->bqk", xw_ref, x_bf,
                            preferred_element_type=jnp.float32)
    tree_expect = jax.nn.softmax(scores_ref, axis=-1)
    proj_expect = jnp.dot(x_bf.reshape(B * S, H), wproj_bf,
                          preferred_element_type=jnp.float32).reshape(B, S, P + D)

    assert jnp.allclose(soft_tree, tree_expect, atol=1e-2)
    assert jnp.allclose(jnp.sum(soft_tree, axis=-1), 1.0, atol=5e-3)
    # head index must be the first argmax of the (positive-scaled) tree rows.
    assert jnp.array_equal(head_idx,
                           jnp.argmax(soft_tree, axis=-1).astype(jnp.int32))
    assert jnp.allclose(pos_logits, proj_expect[..., :P], atol=1e-2)
    assert jnp.allclose(dep_logits, proj_expect[..., P:], atol=1e-2)

    print("KERNEL_OK")
</pallas_src>

<mosaic_0001>
module attributes {stable_mosaic.version = 11 : i64} {
  func.func @_parser_kernel(%arg0: i32, %arg1: i32, %arg2: memref<1x8x32xbf16, #tpu.memory_space<vmem>>, %arg3: memref<1x8x32xbf16, #tpu.memory_space<vmem>>, %arg4: memref<32x32xbf16, #tpu.memory_space<vmem>>, %arg5: memref<32x128xbf16, #tpu.memory_space<vmem>>, %arg6: memref<1x8x8xf32, #tpu.memory_space<vmem>>, %arg7: memref<1x1x8xi32, #tpu.memory_space<vmem>>, %arg8: memref<1x8x128xf32, #tpu.memory_space<vmem>>) attributes {dimension_semantics = [#tpu.dimension_semantics<parallel>, #tpu.dimension_semantics<parallel>], iteration_bounds = array<i64: 2, 1>, scalar_prefetch = 0 : i64, scratch_operands = 0 : i64, tpu.core_type = #tpu.core_type<tc>, window_params = [{transform_indices = @transform_0, window_bounds = array<i64: 1, 8, 32>}, {transform_indices = @transform_1, window_bounds = array<i64: 1, 8, 32>}, {pipeline_mode = #tpu.pipeline_mode<synchronous>, transform_indices = @transform_2, window_bounds = array<i64: 32, 32>}, {pipeline_mode = #tpu.pipeline_mode<synchronous>, transform_indices = @transform_3, window_bounds = array<i64: 32, 128>}, {transform_indices = @transform_4, window_bounds = array<i64: 1, 8, 8>}, {transform_indices = @transform_5, window_bounds = array<i64: 1, 1, 8>}, {transform_indices = @transform_6, window_bounds = array<i64: 1, 8, 128>}]} {
    %c0 = arith.constant 0 : index
    %c0_0 = arith.constant 0 : index
    %c0_1 = arith.constant 0 : index
    %0 = vector.load %arg2[%c0, %c0_0, %c0_1] : memref<1x8x32xbf16, #tpu.memory_space<vmem>>, vector<1x8x32xbf16>
    %c0_2 = arith.constant 0 : index
    %c0_3 = arith.constant 0 : index
    %c0_4 = arith.constant 0 : index
    %1 = vector.load %arg3[%c0_2, %c0_3, %c0_4] : memref<1x8x32xbf16, #tpu.memory_space<vmem>>, vector<1x8x32xbf16>
    %c0_5 = arith.constant 0 : index
    %c0_6 = arith.constant 0 : index
    %2 = vector.load %arg4[%c0_5, %c0_6] : memref<32x32xbf16, #tpu.memory_space<vmem>>, vector<32x32xbf16>
    %c0_7 = arith.constant 0 : index
    %c0_8 = arith.constant 0 : index
    %3 = vector.load %arg5[%c0_7, %c0_8] : memref<32x128xbf16, #tpu.memory_space<vmem>>, vector<32x128xbf16>
    %4 = vector.shape_cast %0 : vector<1x8x32xbf16> to vector<8x32xbf16>
    %cst = arith.constant dense<0.000000e+00> : vector<8x32xf32>
    %5 = tpu.matmul %4, %2, %cst {dimension_numbers = #tpu.dot_dimension_numbers<[1], [0], [0], [1], [0, 0, 1, 1], [], []>} : vector<8x32xbf16>, vector<32x32xbf16>, vector<8x32xf32> -> vector<8x32xf32>
    %6 = vector.shape_cast %5 : vector<8x32xf32> to vector<1x8x32xf32>
    %7 = arith.truncf %6 : vector<1x8x32xf32> to vector<1x8x32xbf16>
    "tpu.trace_start"() <{level = 10 : i32, message = "bqh,bkh->bqk"}> : () -> ()
    %cst_9 = arith.constant dense<0.000000e+00> : vector<1x8x8xf32>
    %8 = tpu.matmul %7, %1, %cst_9 {dimension_numbers = #tpu.dot_dimension_numbers<[2], [2], [1], [1], [0, 0, 0, 1, 1, 1], [0], [0]>} : vector<1x8x32xbf16>, vector<1x8x32xbf16>, vector<1x8x8xf32> -> vector<1x8x8xf32>
    "tpu.trace_stop"() : () -> ()
    %cst_10 = arith.constant dense<0xFF800000> : vector<1x8xf32>
    %9 = vector.multi_reduction <maximumf>, %8, %cst_10 [2] : vector<1x8x8xf32> to vector<1x8xf32>
    %10 = vector.shape_cast %9 : vector<1x8xf32> to vector<1x8x1xf32>
    %11 = vector.broadcast %10 : vector<1x8x1xf32> to vector<1x8x8xf32>
    %12 = arith.subf %8, %11 : vector<1x8x8xf32>
    %13 = math.exp %12 : vector<1x8x8xf32>
    %cst_11 = arith.constant dense<0.000000e+00> : vector<1x8xf32>
    %14 = vector.multi_reduction <add>, %13, %cst_11 [2] : vector<1x8x8xf32> to vector<1x8xf32>
    %15 = vector.shape_cast %14 : vector<1x8xf32> to vector<1x8x1xf32>
    %16 = tpu.reciprocal %15 {approx = true} : vector<1x8x1xf32> -> vector<1x8x1xf32>
    %17 = vector.broadcast %16 : vector<1x8x1xf32> to vector<1x8x8xf32>
    %18 = arith.mulf %13, %17 : vector<1x8x8xf32>
    %c0_12 = arith.constant 0 : index
    %c0_13 = arith.constant 0 : index
    %c0_14 = arith.constant 0 : index
    %19 = vector.load %arg6[%c0_12, %c0_13, %c0_14] : memref<1x8x8xf32, #tpu.memory_space<vmem>>, vector<1x8x8xf32>
    tpu.vector_store %arg6[%c0_12, %c0_13, %c0_14], %18 {strides = array<i32>} : memref<1x8x8xf32, #tpu.memory_space<vmem>>, vector<1x8x8xf32>,
    %20 = tpu.iota {dimensions = array<i32: 2>} : vector<1x1x8xi32>
    %cst_15 = arith.constant 0.000000e+00 : f32
    %21 = vector.broadcast %cst_15 : f32 to vector<1x8x8xf32>
    %22 = arith.cmpf oge, %12, %21 : vector<1x8x8xf32>
    %c8_i32 = arith.constant 8 : i32
    %23 = vector.shape_cast %20 : vector<1x1x8xi32> to vector<1x1x8xi32>
    %24 = vector.broadcast %23 : vector<1x1x8xi32> to vector<1x8x8xi32>
    %25 = vector.broadcast %c8_i32 : i32 to vector<1x8x8xi32>
    %26 = arith.select %22, %24, %25 : vector<1x8x8xi1>, vector<1x8x8xi32>
    %cst_16 = arith.constant dense<2147483647> : vector<1x8xi32>
    %27 = vector.multi_reduction <minsi>, %26, %cst_16 [2] : vector<1x8x8xi32> to vector<1x8xi32>
    %28 = vector.shape_cast %27 : vector<1x8xi32> to vector<1x1x8xi32>
    %c0_17 = arith.constant 0 : index
    %c0_18 = arith.constant 0 : index
    %c0_19 = arith.constant 0 : index
    %29 = vector.load %arg7[%c0_17, %c0_18, %c0_19] : memref<1x1x8xi32, #tpu.memory_space<vmem>>, vector<1x1x8xi32>
    tpu.vector_store %arg7[%c0_17, %c0_18, %c0_19], %28 {strides = array<i32>} : memref<1x1x8xi32, #tpu.memory_space<vmem>>, vector<1x1x8xi32>,
    %cst_20 = arith.constant dense<0.000000e+00> : vector<8x128xf32>
    %30 = tpu.matmul %4, %3, %cst_20 {dimension_numbers = #tpu.dot_dimension_numbers<[1], [0], [0], [1], [0, 0, 1, 1], [], []>} : vector<8x32xbf16>, vector<32x128xbf16>, vector<8x128xf32> -> vector<8x128xf32>
    %31 = vector.shape_cast %30 : vector<8x128xf32> to vector<1x8x128xf32>
    %c0_21 = arith.constant 0 : index
    %c0_22 = arith.constant 0 : index
    %c0_23 = arith.constant 0 : index
    %32 = vector.load %arg8[%c0_21, %c0_22, %c0_23] : memref<1x8x128xf32, #tpu.memory_space<vmem>>, vector<1x8x128xf32>
    tpu.vector_store %arg8[%c0_21, %c0_22, %c0_23], %31 {strides = array<i32>} : memref<1x8x128xf32, #tpu.memory_space<vmem>>, vector<1x8x128xf32>,
    return
  }
  func.func @transform_0(%arg0: i32, %arg1: i32) -> (i32, i32, i32) {
    %c0_i32 = arith.constant 0 : i32
    %c0_i32_0 = arith.constant 0 : i32
    return %arg0, %arg1, %c0_i32 : i32, i32, i32
  }
  func.func @transform_1(%arg0: i32, %arg1: i32) -> (i32, i32, i32) {
    %c0_i32 = arith.constant 0 : i32
    %c0_i32_0 = arith.constant 0 : i32
    %c0_i32_1 = arith.constant 0 : i32
    return %arg0, %c0_i32, %c0_i32_0 : i32, i32, i32
  }
  func.func @transform_2(%arg0: i32, %arg1: i32) -> (i32, i32) {
    %c0_i32 = arith.constant 0 : i32
    %c0_i32_0 = arith.constant 0 : i32
    %c0_i32_1 = arith.constant 0 : i32
    return %c0_i32, %c0_i32_0 : i32, i32
  }
  func.func @transform_3(%arg0: i32, %arg1: i32) -> (i32, i32) {
    %c0_i32 = arith.constant 0 : i32
    %c0_i32_0 = arith.constant 0 : i32
    %c0_i32_1 = arith.constant 0 : i32
    return %c0_i32, %c0_i32_0 : i32, i32
  }
  func.func @transform_4(%arg0: i32, %arg1: i32) -> (i32, i32, i32) {
    %c0_i32 = arith.constant 0 : i32
    %c0_i32_0 = arith.constant 0 : i32
    return %arg0, %arg1, %c0_i32 : i32, i32, i32
  }
  func.func @transform_5(%arg0: i32, %arg1: i32) -> (i32, i32, i32) {
    %c0_i32 = arith.constant 0 : i32
    %c0_i32_0 = arith.constant 0 : i32
    return %arg0, %c0_i32, %arg1 : i32, i32, i32
  }
  func.func @transform_6(%arg0: i32, %arg1: i32) -> (i32, i32, i32) {
    %c0_i32 = arith.constant 0 : i32
    %c0_i32_0 = arith.constant 0 : i32
    return %arg0, %arg1, %c0_i32 : i32, i32, i32
  }
}

</mosaic_0001>

<bundles_post_ra>
// kernel: tpu_custom_call.1
= control target key start
LH: loop header
LB: loop body
LE: loop exit
PB: predicated region body
PF: predicated region fallthrough
CT: control target
= control target key end

     0   :  { %s1572_s0 = inlined_call_operand.hbm [shape: bf16[2,8,32], index: 0, kind: input, shape index: {}]   ;;  %s1573_s1 = inlined_call_operand.hbm [shape: bf16[2,8,32], index: 1, kind: input, shape index: {}]   ;;  %s1574_s2 = inlined_call_operand.hbm [shape: bf16[32,32], index: 2, kind: input, shape index: {}]   ;;  %s1575_s3 = inlined_call_operand.hbm [shape: bf16[32,128], index: 3, kind: input, shape index: {}]   ;;  %s1576_s4 = inlined_call_operand.hbm [shape: f32[2,8,8], index: 4, kind: output, shape index: {0}]   ;;  %s1577_s5 = inlined_call_operand.hbm [shape: s32[2,1,8], index: 5, kind: output, shape index: {1}]   ;;  %s1578_s6 = inlined_call_operand.hbm [shape: f32[2,8,128], index: 6, kind: output, shape index: {2}]  }
   0x1   :  { %1581 = sst [smem:[#allocation20_spill]] %s1572_s0 }
   0x2   :  { %1582 = sst [smem:[#allocation21_spill]] %s1573_s1 }
   0x3   :  { %1583 = sst [smem:[#allocation22_spill]] %s1574_s2 }
   0x4   :  { %1584 = sst [smem:[#allocation23_spill]] %s1575_s3 }
   0x5   :  { %12 = vsyncpa [#allocation3], 0 }
   0x6   :  { %14 = vsyncpa [#allocation3 + $0x1], 0 }
   0x7   :  { %15 = vsyncpa [#allocation6], 0 }
   0x8   :  { %17 = vsyncpa [#allocation6 + $0x1], 0 }
   0x9   :  { %18 = vsyncpa [#allocation9], 0 }
   0xa   :  { %19 = vsyncpa [#allocation4], 0 }
   0xb   :  { %21 = vsyncpa [#allocation4 + $0x1], 0 }
   0xc   :  { %22 = vsyncpa [#allocation12], 0 }
   0xd   :  { %24 = vsyncpa [#allocation12 + $0x1], 0  ;;  %s1284_s21 = smov 0   ;;  %s1286_s22 = smov 0  }
   0xe   :  { %s1288_s23 = smov 0   ;;  %s1290_s24 = smov 0  }
   0xf   :  { %s1292_s25 = smov 0   ;;  %s1294_s26 = smov 0  }
  0x10 LB: > { %s1315_s27 = sadd.s32 4294967295, %s1236_s26   ;;  %s1580_s28 = sadd.s32 4294967294, %s1236_s26   ;;  %s1236_s26 = sphi %s1294_s26, %s30_s26   ;;  %s1232_s25 = sphi %s1292_s25, %s1607_s25   ;;  %s1228_s24 = sphi %s1290_s24, %s1606_s24   ;;  %s1224_s23 = sphi %s1288_s23, %s1605_s23   ;;  %s1220_s22 = sphi %s1286_s22, %s1604_s22   ;;  %s1216_s21 = sphi %s1284_s21, %s1603_s21  }
  0x11   : > { %p64_p0 = scmp.ne.s32.totalorder %s1220_s22, %s1216_s21  ;;  %p1579_p1 = scmp.eq.s32.totalorder %s1315_s27, 0 }
  0x12   : > { %p164_p3 = scmp.eq.s32.totalorder %s1580_s28, 1  ;;  %p811_p5 = scmp.ge.s32.totalorder %s1236_s26, 1 }
  0x13   : > { %p1326_p4 = por %p1579_p1, %p64_p0  ;;  %p227_p7 = scmp.lt.s32.totalorder %s1236_s26, 3 }
  0x14   : > { %p1331_p6 = por %p164_p3, %p64_p0  ;;  %s1238_s8 = smov [#allocation7]  }
  0x15   : > { %p1336_p8 = pnand %p811_p5, %p227_p7  ;;  %s239_s9 = sshll.u32 %s1238_s8, 4  ;;  %s240_s9 = int_to_ptr.vmem [resolvable:$true] %s239_s9 }
  0x16   : > { %s1586_s30 = scalar_select %p1331_p6, 1, 0 }
  0x17   : > { %p888_p9 = pneg %p1336_p8  ;;  %s1239_s11 = smov [#allocation8]  }
  0x18   : > { %s252_s12 = sshll.u32 %s1239_s11, 4  ;;  %s991_s13 = scalar_lea.vmem %s240_s9, 256  ;;  %s253_s12 = int_to_ptr.vmem [resolvable:$true] %s252_s12 }
  0x19   : > { %p1345_p11 = pnand %p888_p9, %p1579_p1  ;;  %p992_p13 = scmp.ne.s32.totalorder %s240_s9, %s991_s13 }
  0x1a   : > { %p999_p5 = scmp.lt.s32.totalorder %s240_s9, %s240_s9  ;;  %p1000_p7 = scmp.lt.s32.totalorder %s991_s13, %s991_s13 }
  0x1b   : > { %p982_p12 = pneg %p1345_p11 }
  0x1c   : > { %p1001_p10 = por %p1000_p7, %p999_p5 }
  0x1d   : > { %p994_p0 = pnand %p992_p13, %p982_p12 }
  0x1f   : > { %p995_p3 = pneg %p994_p0 }
  0x21   : > { %p1002_p9 = pnand %p1001_p10, %p995_p3 }
  0x23   : > { %1005 = shalt.err (!%p1002_p9)
}
  0x24   : > { %s1240_s14 = smov 64   ;;  %s1241_s15 = smov 4  }
  0x25   : > { %s1589_s2 = sld [smem:[#allocation22_spill]]  ;;  %s1017_s18 = scalar_lea.vmem %s253_s12, 256 }
  0x26   : > { %p1018_p1 = scmp.ne.s32.totalorder %s253_s12, %s1017_s18  ;;  %p1025_p2 = scmp.lt.s32.totalorder %s253_s12, %s253_s12 }
  0x27   : > { %p1026_p6 = scmp.lt.s32.totalorder %s1017_s18, %s1017_s18 }
  0x28   : > { %p1020_p13 = pnand %p1018_p1, %p982_p12 }
  0x29   : > { %p1027_p5 = por %p1026_p6, %p1025_p2 }
  0x2a   : > { %p1021_p0 = pneg %p1020_p13 }
  0x2b   : > { %891 = dma.hbm_to_vmem [thread:$0]  (!%p1345_p11), %s1589_s2, 256, %s240_s9, [#allocation6], %s1240_s14, %s1240_s14, %s1241_s15  }
  0x2c   : > { %p1028_p10 = pnand %p1027_p5, %p1021_p0 }
  0x2e   : > { %1031 = shalt.err (!%p1028_p10)
}
  0x2f   : > { %s1590_s3 = sld [smem:[#allocation23_spill]]  ;;  %s42_s8 = sadd.s32 1, %s1232_s25 }
  0x30   : > { %s51_s9 = sadd.s32 1, %s1224_s23  ;;  %p44_p1 = scmp.ge.s32.totalorder %s42_s8, 2 }
  0x31   : > { %p58_p2 = scmp.ne.s32.totalorder %s1224_s23, %s1220_s22  ;;  %p59_p6 = scmp.eq.s32.totalorder %s1236_s26, 0 }
  0x32   : > { %p914_p12 = scmp.lt.s32.totalorder %s1236_s26, 2  ;;  %s1609_s8 = smov (%p44_p1, %s42_s8), 0 }
  0x33   : > { %p60_p3 = por %p59_p6, %p58_p2  ;;  %p1591_p7 = scmp.eq.s32.totalorder %s1315_s27, 1 }
  0x34   : > { %s46_s11 = ssub.s32 %s1232_s25, %s1609_s8  ;;  %s266_s13 = sand.u32 1, %s1224_s23  }
  0x35   : > { %894 = dma.hbm_to_vmem [thread:$0]  (!%p1345_p11), %s1590_s3, 256, %s253_s12, [#allocation9], %s1240_s14, %s1240_s14, %s1241_s15  }
  0x36   : > { %p1377_p9 = por %p1591_p7, %p58_p2  ;;  %p49_p13 = scmp.eq.s32.totalorder %s46_s11, 0 }
  0x37   : > { %s815_s12 = sshll.u32 %s266_s13, 2  ;;  %s816_s14 = sshll.u32 %s1232_s25, 6 }
  0x38   : > { %s1386_s15 = scalar_select %p49_p13, %s1224_s23, %s51_s9  }
  0x39   : > { %s1593_s0 = sld [smem:[#allocation20_spill]]  ;;  %s270_s19 = scalar_lea.vmem [#allocation2], %s815_s12 }
  0x3a   : > { %s278_s20 = sshll.u32 %s270_s19, 4  ;;  %p1393_p11 = pnand %p914_p12, %p60_p3  ;;  %s279_s20 = int_to_ptr.vmem [resolvable:$true] %s278_s20 }
  0x3b   : > { %s1595_s1 = sld [smem:[#allocation21_spill]]  ;;  %s267_s9 = scalar_lea.sflag [#allocation3], %s266_s13 }
  0x3c   : > { %p1034_p0 = pneg %p1393_p11  ;;  %s1045_s16 = scalar_lea.vmem %s279_s20, 64 }
  0x3d   : > { %p1046_p5 = scmp.ne.s32.totalorder %s279_s20, %s1045_s16  ;;  %s1242_s17 = smov [#allocation2]  }
  0x3e   : > { %s1050_s19 = sshll.u32 %s1242_s17, 4  ;;  %s1051_s19 = int_to_ptr.vmem [resolvable:$false] %s1050_s19 }
  0x3f   : > { %s276_s18 = scalar_lea.hbm %s1593_s0, %s816_s14  ;;  %p1048_p10 = pnand %p1046_p5, %p1034_p0 }
  0x40   : > { %s1052_s0 = scalar_lea.vmem %s1051_s19, 128  ;;  %p1053_p2 = scmp.lt.s32.totalorder %s279_s20, %s1051_s19 }
  0x41   : > { %s1400_s3 = scalar_lea.hbm %s1595_s1, %s816_s14  ;;  %p1049_p1 = pneg %p1048_p10 }
  0x42   : > { %p1054_p6 = scmp.lt.s32.totalorder %s1052_s0, %s1045_s16 }
  0x44   : > { %p1055_p12 = por %p1054_p6, %p1053_p2 }
  0x46   : > { %p1056_p3 = pnand %p1055_p12, %p1049_p1 }
  0x48   : > { %1059 = shalt.err (!%p1056_p3)
}
  0x49   : > { %898 = dma.hbm_to_vmem [thread:$0]  (!%p1393_p11), %s276_s18, 64, %s279_s20, %s267_s9  }
  0x4a   : > { %s285_s2 = sand.u32 1, %s1236_s26   ;;  %s289_s13 = scalar_lea.vmem [#allocation5], %s815_s12 }
  0x4b   : > { %s296_s14 = sshll.u32 %s289_s13, 4  ;;  %s286_s11 = scalar_lea.sflag [#allocation6], %s285_s2  ;;  %s297_s14 = int_to_ptr.vmem [resolvable:$true] %s296_s14 }
  0x4c   : > { %s1073_s1 = scalar_lea.vmem %s297_s14, 64  ;;  %s1243_s0 = smov [#allocation5]  }
  0x4d   : > { %p1074_p7 = scmp.ne.s32.totalorder %s297_s14, %s1073_s1  ;;  %s1078_s16 = sshll.u32 %s1243_s0, 4  ;;  %s1079_s16 = int_to_ptr.vmem [resolvable:$false] %s1078_s16 }
  0x4e   : > { %s1080_s17 = scalar_lea.vmem %s1079_s16, 128  ;;  %p1081_p10 = scmp.lt.s32.totalorder %s297_s14, %s1079_s16 }
  0x4f   : > { %p1076_p13 = pnand %p1074_p7, %p1034_p0  ;;  %p1082_p1 = scmp.lt.s32.totalorder %s1080_s17, %s1073_s1 }
  0x51   : > { %p1077_p5 = pneg %p1076_p13  ;;  %p1083_p2 = por %p1082_p1, %p1081_p10 }
  0x53   : > { %p1084_p6 = pnand %p1083_p2, %p1077_p5 }
  0x55   : > { %1087 = shalt.err (!%p1084_p6)
}
  0x56   : > { %901 = dma.hbm_to_vmem [thread:$0]  (!%p1393_p11), %s1400_s3, 64, %s297_s14, %s286_s11  }
  0x57   : > { %305 = sbr.rel (%p1336_p8) target bundleno = 966 (0x3c6), region = 36  ;;  %s1419_s12 = sand.u32 (!%p1336_p8), 1, %s1220_s22  }
  0x58   : > { %s820_s18 = sshll.u32 (!%p1336_p8), %s1419_s12, 2  ;;  %s308_s20 = scalar_lea.sflag (!%p1336_p8), [#allocation3], %s1419_s12 }
  0x59   : > { %s311_s9 = scalar_lea.vmem (!%p1336_p8), [#allocation2], %s820_s18 }
  0x5c   : > { %1191 = dma.done.wait (%p1326_p4), %s308_s20, 64  }
  0x5d   : > { %1193 = vsyncadd (%p1326_p4), %s308_s20, 4294967232  ;;  %s316_s1 = sand.u32 1, %s1315_s27   ;;  %s320_s28 = scalar_lea.vmem [#allocation5], %s820_s18 }
  0x5e   : > { %s317_s3 = scalar_lea.sflag [#allocation6], %s316_s1 }
  0x5f   : > { %1195 = dma.done.wait (%p1326_p4), %s317_s3, 64  }
  0x60   : > { %1197 = vsyncadd (%p1326_p4), %s317_s3, 4294967232  ;;  %p1596_p8 = scmp.eq.s32.totalorder %s1315_s27, 0 }
  0x62   : > { %1199 = dma.done.wait (%p1596_p8), [#allocation6], 256   ;;  %p1597_p11 = pmov %p1596_p8 }
  0x63   : > { %p1598_p0 = pmov %p1596_p8 }
  0x64   : > { %1201 = vsyncadd (%p1597_p11), [#allocation6], 4294967040 }
  0x65   : > { %1203 = dma.done.wait (%p1598_p0), [#allocation9], 256   ;;  %p1599_p12 = pmov %p1598_p0 }
  0x66   : > { %v1244_v0 = vmov 0.0   ;;  %vm1245_vm0 = vmmov 0   ;;  %v972_v1 = vld [vmem:[#allocation7 + $0x8] sm:$0xff]   ;;  %v973_v2 = vld [vmem:[#allocation7] sm:$0xff]   ;;  %vm394_vm1 = vcmask 261120   ;;  %vm485_vm2 = vcmask 64512  }
  0x67   : > { %1205 = vsyncadd (%p1599_p12), [#allocation9], 4294967040  ;;  %848 = vmatprep.subr.bf16.mxu0 %v1244_v0  ;;  %852 = vmatprep.mubr.msk.bf16.mxu0 %vm1245_vm0, %v1244_v0  ;;  %v373_v3 = vld [vmem:[%s320_s28] sm:$0xf]  ;;  %v372_v5 = vld [vmem:[%s311_s9] sm:$0xf]  ;;  %v498_v18 = vlaneseq }
  0x68   : > { %856 = vmatprep.subr.bf16.mxu1 %v1244_v0  ;;  %858 = vmatprep.mubr.msk.bf16.mxu1 %vm1245_vm0, %v1244_v0  ;;  %v443_v4 = vsel %vm394_vm1, %v373_v3, 0  ;;  %v974_v16 = vld [vmem:[#allocation8 + $0x8] sm:$0xff]   ;;  %v975_v17 = vld [vmem:[#allocation8] sm:$0xff]   ;;  %s824_s29 = sshll.u32 %s1419_s12, 3  ;;  %s835_s19 = sshll.u32 %s1228_s24, 7 }
  0x69   : > { %849 = vmatpush3.bf16.msra.mxu0 %v972_v1  ;;  %857 = vmatpush3.bf16.xpose.msra.mxu1 %v443_v4  ;;  %v1451_v19 = vand.u32 127, %v498_v18  ;;  %s1457_s7 = scalar_lea.vmem [#allocation13], %s824_s29  ;;  %s357_s2 = scalar_lea.vmem [#allocation10], %s824_s29 }
  0x6a   : > { %850 = vmatprep.subr.bf16.mxu0 %v1244_v0  ;;  %s600_s13 = sshll.u32 %s357_s2, 4  ;;  %s598_s0 = scalar_lea.hbm %s1576_s4, %s835_s19  ;;  %s601_s13 = int_to_ptr.vmem [resolvable:$true] %s600_s13 }
  0x6b   : > { %s577_s16 = scalar_lea.sflag [#allocation4], %s1419_s12  ;;  %s1088_s17 = scalar_lea.vmem %s601_s13, 128 }
  0x6c   : > { %p1089_p4 = scmp.ne.s32.totalorder %s601_s13, %s1088_s17  ;;  %s1246_s18 = smov [#allocation10]  }
  0x6d   : > { %851 = vmatpush3.bf16.msra.mxu0 %v973_v2  ;;  %s1092_s20 = sshll.u32 %s1246_s18, 4  ;;  %s1093_s20 = int_to_ptr.vmem [resolvable:$false] %s1092_s20 }
  0x6e   : > { %862 = vmatprep.subr.bf16.mxu0 %v1244_v0  ;;  %p1090_p3 = pnand %p1089_p4, %p1377_p9  ;;  %s1094_s9 = scalar_lea.vmem %s1093_s20, 256 }
  0x6f   : > { %p1095_p13 = scmp.lt.s32.totalorder %s601_s13, %s1093_s20  ;;  %p1096_p5 = scmp.lt.s32.totalorder %s1094_s9, %s1088_s17 }
  0x70   : > { %853 = vmatmul.mubr.msk.bf16.vlgmr.msra.gmra.mxu0 %vm394_vm1, %v372_v5  ;;  %p1091_p7 = pneg %p1090_p3 }
  0x71   : > { %866 = vmatprep.mubr.msk.bf16.mxu0 %vm1245_vm0, %v1244_v0  ;;  %863 = vmatpush3.bf16.msra.mxu0 %v974_v16  ;;  %p1097_p10 = por %p1096_p5, %p1095_p13 }
  0x72   : > { %864 = vmatprep.subr.bf16.mxu0 %v1244_v0 }
  0x73   : > { %p1098_p1 = pnand %p1097_p10, %p1091_p7 }
  0x75   : > { %865 = vmatpush3.bf16.msra.mxu0 %v975_v17 }
  0x78   : > { %867 = vmatmul.mubr.msk.bf16.vlgmr.msra.gmra.mxu0 %vm394_vm1, %v372_v5 }
 0x130   : > { %v432_v6 = vpop.f32.mrf.mxu0 }
 0x131   : > { %v438_v7 = vpack.c.bf16 %v432_v6, %v432_v6 }
 0x132   : > { %v854_v8 = vpop.f32.mrf.mxu0 }
 0x133   : > { %859 = vmatmul.mubr.msk.bf16.vlgmr.msra.gmra.mxu1 %vm394_vm1, %v438_v7 }
 0x134   : > { %v435_v9 = vpop.f32.mrf.mxu0 }
 0x136   : > { %v855_v10 = vpop.f32.mrf.mxu0 }
 0x138   : > { %v569_v29 = vpop.f32.mrf.mxu0 }
 0x139   : > { %575 = vst [vmem:[%s1457_s7] sm:$0xff] %v569_v29 }
 0x13a   : > { %v868_v30 = vpop.f32.mrf.mxu0 }
 0x13c   : > { %v572_v31 = vpop.f32.mrf.mxu0 }
 0x13e   : > { %v869_v32 = vpop.f32.mrf.mxu0 }
 0x1f3   : > { %v479_v11 = vpop.f32.mrf.mxu1 }
 0x1f4   : > { %v486_v12 = vsel %vm485_vm2, %v479_v11, -inf }
 0x1f5   : > { %487 = vmax.xlane.f32.xlu0 %v486_v12  ;;  %v860_v13 = vpop.f32.mrf.mxu1 }
 0x1f7   : > { %v482_v14 = vpop.f32.mrf.mxu1 }
 0x1f9   : > { %v861_v15 = vpop.f32.mrf.mxu1 }
 0x27e   : > { %v488_v20 = vpop.xlane.xlu0 %487 }
 0x27f   : > { %v489_v21 = vsub.f32 %v479_v11, %v488_v20 }
 0x281   : > { %v490_v22 = vmul.f32 1.442695, %v489_v21  ;;  %vm500_vm3 = vcmp.ge.f32.partialorder %v489_v21, 0.0 }
 0x282   : > { %v501_v23 = vsel %vm500_vm3, %v1451_v19, 8 }
 0x283   : > { %976 = vpow2.f32 %v490_v22  ;;  %v502_v24 = vsel %vm485_vm2, %v501_v23, 2147483647 }
 0x284   : > { %v504_v25 = vshra.s32 %v502_v24, 16  ;;  %v503_v33 = vand.u32 65535, %v502_v24 }
 0x286   : > { %v506_v26 = vcvt.s32.f32 %v504_v25  ;;  %v505_v35 = vcvt.s32.f32 %v503_v33 }
 0x288   : > { %507 = vmin.xlane.f32.xlu0 %v506_v26 }
 0x290   : > { %v977_v27 = vpop.eup %976 }
 0x291   : > { %v492_v28 = vsel %vm485_vm2, %v977_v27, 0.0 }
 0x292   : > { %493 = vadd.xlane.f32.xlu1 %v492_v28 }
 0x311   : > { %v508_v34 = vpop.xlane.xlu0 %507 }
 0x312   : > { %vm509_vm4 = vcmp.eq.f32.partialorder %v506_v26, %v508_v34 }
 0x313   : > { %v510_v36 = vsel %vm509_vm4, %v505_v35, inf }
 0x314   : > { %511 = vmin.xlane.f32.xlu1 %v510_v36 }
 0x31b   : > { %v494_v37 = vpop.xlane.xlu1 %493 }
 0x31c   : > { %978 = vrcp.f32 %v494_v37 }
 0x329   : > { %v979_v38 = vpop.eup %978 }
 0x32a   : > { %v496_v39 = vmul.f32 %v979_v38, %v977_v27 }
 0x32c   : > { %497 = vst.msk [vmem:[%s357_s2] sm:$0xff] %vm485_vm2, %v496_v39 }
 0x32d   : > { %1101 = shalt.err (!%p1098_p1)
}
 0x32e   : > { %s1102_s3 = scalar_lea.hbm %s598_s0, 128  ;;  %s1106_s2 = scalar_lea.hbm %s1576_s4, 256 }
 0x32f   : > { %p1103_p2 = scmp.ne.s32.totalorder %s598_s0, %s1102_s3  ;;  %p1107_p11 = scmp.lt.s32.totalorder %s598_s0, %s1576_s4 }
 0x330   : > { %p1108_p0 = scmp.lt.s32.totalorder %s1106_s2, %s1102_s3 }
 0x331   : > { %p1104_p6 = pnand %p1103_p2, %p1377_p9 }
 0x332   : > { %p1109_p12 = por %p1108_p0, %p1107_p11 }
 0x333   : > { %p1105_p8 = pneg %p1104_p6 }
 0x335   : > { %p1110_p4 = pnand %p1109_p12, %p1105_p8 }
 0x337   : > { %1113 = shalt.err (!%p1110_p4)
}
 0x338   : > { %882 = dma.vmem_to_hbm [thread:$0]  (%p1377_p9), %s601_s13, 128, %s598_s0, %s577_s16   ;;  %v514_v40 = vcvt.f32.s32 %v508_v34  ;;  %v518_v41 = vshrl.u32 %v498_v18, 7  ;;  %vm521_vm5 = vcmask 57344  }
 0x339   : > { %s836_s17 = sshll.u32 %s1228_s24, 4  ;;  %s363_s18 = scalar_lea.vmem [#allocation11], %s1419_s12 }
 0x33a   : > { %v515_v43 = vshll.u32 %v514_v40, 16  ;;  %v519_v44 = vsub.s32 %v1451_v19, %v518_v41  ;;  %s614_s20 = sshll.u32 %s363_s18, 4  ;;  %s628_s9 = sshll.u32 %s1457_s7, 4  ;;  %s1490_s20 = int_to_ptr.vmem [resolvable:$true] %s614_s20  ;;  %s1492_s9 = int_to_ptr.vmem [resolvable:$true] %s628_s9 }
 0x33b   : > { %s1488_s0 = scalar_lea.hbm %s1577_s5, %s836_s17  ;;  %s1499_s7 = scalar_lea.hbm %s1578_s6, %s835_s19 }
 0x33c   : > { %s1503_s28 = scalar_lea.sflag [#allocation12], %s316_s1  ;;  %s1114_s29 = scalar_lea.vmem %s1490_s20, 16 }
 0x33d   : > { %p1115_p3 = scmp.ne.s32.totalorder %s1490_s20, %s1114_s29  ;;  %s1247_s2 = smov [#allocation11]  }
 0x33e   : > { %s1118_s14 = sshll.u32 %s1247_s2, 4  ;;  %s1119_s14 = int_to_ptr.vmem [resolvable:$false] %s1118_s14 }
 0x33f   : > { %p1116_p7 = pnand %p1115_p3, %p1377_p9  ;;  %s1120_s11 = scalar_lea.vmem %s1119_s14, 32 }
 0x340   : > { %p1121_p5 = scmp.lt.s32.totalorder %s1490_s20, %s1119_s14  ;;  %p1122_p10 = scmp.lt.s32.totalorder %s1120_s11, %s1114_s29 }
 0x341   : > { %p1117_p13 = pneg %p1116_p7 }
 0x342   : > { %p1123_p1 = por %p1122_p10, %p1121_p5 }
 0x344   : > { %p1124_p2 = pnand %p1123_p1, %p1117_p13 }
 0x39d   : > { %v512_v42 = vpop.xlane.xlu1 %511 }
 0x39e   : > { %v513_v45 = vcvt.f32.s32 %v512_v42 }
 0x3a0   : > { %v516_v46 = vadd.s32 %v515_v43, %v513_v45 }
 0x3a2   : > { %v520_v47 = vrot.slane %v516_v46, %v519_v44 }
 0x3a4   : > { %522 = vst.msk [vmem:[%s363_s18] sm:$0x1] %vm521_vm5, %v520_v47 }
 0x3a5   : > { %1127 = shalt.err (!%p1124_p2)
}
 0x3a6   : > { %s1128_s24 = scalar_lea.hbm %s1488_s0, 16  ;;  %s1132_s19 = scalar_lea.hbm %s1577_s5, 32 }
 0x3a7   : > { %p1129_p6 = scmp.ne.s32.totalorder %s1488_s0, %s1128_s24  ;;  %p1133_p0 = scmp.lt.s32.totalorder %s1488_s0, %s1577_s5 }
 0x3a8   : > { %p1134_p12 = scmp.lt.s32.totalorder %s1132_s19, %s1128_s24 }
 0x3a9   : > { %p1130_p8 = pnand %p1129_p6, %p1377_p9 }
 0x3aa   : > { %p1135_p4 = por %p1134_p12, %p1133_p0 }
 0x3ab   : > { %p1131_p11 = pneg %p1130_p8 }
 0x3ad   : > { %p1136_p3 = pnand %p1135_p4, %p1131_p11 }
 0x3af   : > { %1139 = shalt.err (!%p1136_p3)
}
 0x3b0   : > { %883 = dma.vmem_to_hbm [thread:$0]  (%p1377_p9), %s1490_s20, 16, %s1488_s0, %s1503_s28  }
 0x3b1   : > { %s1140_s3 = scalar_lea.vmem %s1492_s9, 128  ;;  %s1248_s13 = smov [#allocation13]  }
 0x3b2   : > { %p1141_p7 = scmp.ne.s32.totalorder %s1492_s9, %s1140_s3  ;;  %s1144_s16 = sshll.u32 %s1248_s13, 4  ;;  %s1145_s16 = int_to_ptr.vmem [resolvable:$false] %s1144_s16 }
 0x3b3   : > { %s1146_s12 = scalar_lea.vmem %s1145_s16, 256  ;;  %p1147_p10 = scmp.lt.s32.totalorder %s1492_s9, %s1145_s16 }
 0x3b4   : > { %p1142_p13 = pnand %p1141_p7, %p1377_p9  ;;  %p1148_p1 = scmp.lt.s32.totalorder %s1146_s12, %s1140_s3 }
 0x3b6   : > { %p1143_p5 = pneg %p1142_p13  ;;  %p1149_p2 = por %p1148_p1, %p1147_p10 }
 0x3b8   : > { %p1150_p6 = pnand %p1149_p2, %p1143_p5 }
 0x3ba   : > { %1153 = shalt.err (!%p1150_p6)
}
 0x3bb   : > { %s1154_s29 = scalar_lea.hbm %s1499_s7, 128  ;;  %s1158_s2 = scalar_lea.hbm %s1578_s6, 256 }
 0x3bc   : > { %p1155_p8 = scmp.ne.s32.totalorder %s1499_s7, %s1154_s29  ;;  %p1159_p12 = scmp.lt.s32.totalorder %s1499_s7, %s1578_s6 }
 0x3bd   : > { %p1160_p4 = scmp.lt.s32.totalorder %s1158_s2, %s1154_s29 }
 0x3be   : > { %p1156_p11 = pnand %p1155_p8, %p1377_p9 }
 0x3bf   : > { %p1161_p3 = por %p1160_p4, %p1159_p12 }
 0x3c0   : > { %p1157_p0 = pneg %p1156_p11 }
 0x3c2   : > { %p1162_p7 = pnand %p1161_p3, %p1157_p0 }
 0x3c4   : > { %1165 = shalt.err (!%p1162_p7)
}
 0x3c5   : > { %884 = dma.vmem_to_hbm [thread:$0]  (%p1377_p9), %s1492_s9, 128, %s1499_s7, %s1503_s28  }
 0x3c6 PF: > { %s640_s24 = sand.u32 1, %s1216_s21   ;;  %p1600_p13 = scmp.ne.s32.totalorder %s1586_s30, 0 }
 0x3c7   : > { %p1601_p5 = scmp.ge.s32.totalorder %s1236_s26, 2  ;;  %s641_s27 = scalar_lea.sflag [#allocation4], %s640_s24 }
 0x3c9   : > { %p903_p10 = pnand %p1601_p5, %p1600_p13 }
 0x3cb   : > { %p904_p1 = pneg %p903_p10 }
 0x3cd   : > { %1207 = dma.done.wait (%p904_p1), %s641_s27, 128  }
 0x3ce   : > { %1209 = vsyncadd (%p904_p1), %s641_s27, 4294967168  ;;  %s1602_s1 = sadd.s32 4294967294, %s1236_s26  }
 0x3cf   : > { %s649_s19 = sand.u32 1, %s1602_s1  }
 0x3d0   : > { %s650_s10 = scalar_lea.sflag [#allocation12], %s649_s19 }
 0x3d1   : > { %1211 = dma.done.wait (%p904_p1), %s650_s10, 144  }
 0x3d2   : > { %1213 = vsyncadd (%p904_p1), %s650_s10, 4294967152  ;;  %s30_s26 = sadd.s32 1, %s1236_s26   ;;  %s1603_s21 = smov %s1220_s22 }
 0x3d3   : > { %p27_p9 = scmp.ge.s32.totalorder %s30_s26, 4   ;;  %s1604_s22 = smov %s1224_s23 }
 0x3d4   : > { %s1605_s23 = smov %s1386_s15  ;;  %s1606_s24 = smov %s1232_s25 }
 0x3d5   : > { %s1607_s25 = smov %s1609_s8  ;;  %29 = sbr.rel (!%p27_p9) target bundleno = 16 (0x10), region = 134 }
 0x3da   :  { %663 = vsyncpa [#allocation3], 1 }
 0x3db   :  { %665 = vsyncpa [#allocation3 + $0x1], 1 }
 0x3dc   :  { %666 = vsyncpa [#allocation6], 1 }
 0x3dd   :  { %668 = vsyncpa [#allocation6 + $0x1], 1 }
 0x3de   :  { %669 = vsyncpa [#allocation9], 1 }
 0x3df   :  { %670 = vsyncpa [#allocation4], 1 }
 0x3e0   :  { %672 = vsyncpa [#allocation4 + $0x1], 1 }
 0x3e1   :  { %673 = vsyncpa [#allocation12], 1 }
 0x3e2   :  { %675 = vsyncpa [#allocation12 + $0x1], 1 }

</bundles_post_ra>
